<compile_context>
chip_gen: v7x
topology: tpu7x:2x2x1
jax: 0.10.0
libtpu: 0.0.40
codegen_flags: <defaults>
</compile_context>

<pallas_src>
import functools

import jax
import jax.numpy as jnp
from jax.experimental import pallas as pl
from jax.experimental.pallas import tpu as pltpu


def _round_up(n: int, m: int) -> int:
    return ((n + m - 1) // m) * m


def _pad2(a, rows: int, cols: int, fill=0.0):
    r, c = a.shape
    if r == rows and c == cols:
        return a
    return jnp.pad(a, ((0, rows - r), (0, cols - c)), constant_values=fill)


def _net_kernel(x_ref, w1_ref, b1_ref, w2_ref, b2_ref, o_ref):
    # fc1: [TB, S] @ [S, H_p] -> f32 accumulation on the MXU.
    x = x_ref[...].astype(w1_ref.dtype)
    h = jnp.dot(x, w1_ref[...], preferred_element_type=jnp.float32)
    # bias add + ReLU in f32 (v5e VPU has no bf16 elementwise).
    h = jnp.maximum(h + b1_ref[...], 0.0)
    # fc2: [TB, H_p] @ [H_p, A_p] -> f32 accumulation.
    logits = jnp.dot(h.astype(w2_ref.dtype), w2_ref[...],
                     preferred_element_type=jnp.float32)
    logits = logits + b2_ref[...]            # padded action lanes carry -1e30
    # Numerically stable softmax over the last axis (== PyTorch dim=1).
    m = jnp.max(logits, axis=-1, keepdims=True)
    e = jnp.exp(logits - m)
    denom = jnp.sum(e, axis=-1, keepdims=True)
    inv = pl.reciprocal(denom, approx=True)  # EUP vrcp (own VLIW slot)
    inv = inv * (2.0 - denom * inv)          # one Newton step -> ~f32 accuracy
    o_ref[...] = (e * inv).astype(o_ref.dtype)


def prepare_params(w1, b1, w2, b2, *, matmul_dtype=jnp.bfloat16):
    """Pad/cast weights ONCE (hoist out of the rollout loop).

    Layout: w1 [n_states, n_hiddens], b1 [1, n_hiddens],
            w2 [n_hiddens, n_actions], b2 [1, n_actions]  (i.e. [in, out]).
    Hidden / action dims are padded to 128 lanes; padded action lanes get a
    -1e30 bias so the in-kernel softmax assigns them zero probability.
    """
    S, H = w1.shape
    A = w2.shape[1]
    H_p = _round_up(H, 128)
    A_p = _round_up(A, 128)
    w1_p = _pad2(w1, S, H_p).astype(matmul_dtype)
    b1_p = _pad2(b1, 1, H_p).astype(jnp.float32)
    w2_p = _pad2(w2, H_p, A_p).astype(matmul_dtype)
    b2_p = _pad2(b2, 1, A_p, fill=-1e30).astype(jnp.float32)
    return w1_p, b1_p, w2_p, b2_p


@functools.partial(jax.jit, static_argnames=("n_actions", "block_b"))
def net_forward(x, w1_p, b1_p, w2_p, b2_p, *, n_actions, block_b=1024):
    """x: [B, n_states] f32 -> softmax probabilities [B, n_actions] f32."""
    B, S = x.shape
    H_p = w1_p.shape[1]
    A_p = w2_p.shape[1]

    # Batch tile: multiple of 8 sublanes, <= block_b, <= ceil(B/2) so the grid
    # has >=2 "parallel" steps whenever B > 8 (v7x megacore), never exceeds B.
    half = -(-B // 2)
    TB = min(_round_up(block_b, 8), max(8, _round_up(half, 8)))
    TB = min(TB, _round_up(B, 8))
    grid = (pl.cdiv(B, TB),)

    out_p = pl.pallas_call(
        _net_kernel,
        out_shape=jax.ShapeDtypeStruct((B, A_p), jnp.float32),
        grid=grid,
        in_specs=[
            pl.BlockSpec((TB, S), lambda i: (i, 0)),     # unpadded activations
            pl.BlockSpec((S, H_p), lambda i: (0, 0)),    # weights VMEM-resident
            pl.BlockSpec((1, H_p), lambda i: (0, 0)),
            pl.BlockSpec((H_p, A_p), lambda i: (0, 0)),
            pl.BlockSpec((1, A_p), lambda i: (0, 0)),
        ],
        out_specs=pl.BlockSpec((TB, A_p), lambda i: (i, 0)),  # lane-dense output
        compiler_params=pltpu.CompilerParams(
            dimension_semantics=("parallel",),           # shard batch across TCs
        ),
    )(x, w1_p, b1_p, w2_p, b2_p)

    return out_p[:, :n_actions]


def init_params(key, n_states, n_hiddens, n_actions):
    """Deterministic init mimicking nn.Linear default (uniform +/-1/sqrt(fan_in)).
    Weights are stored as [in, out] (transposed vs PyTorch's [out, in])."""
    k1, k2, k3, k4 = jax.random.split(key, 4)
    lim1 = 1.0 / jnp.sqrt(jnp.float32(n_states))
    lim2 = 1.0 / jnp.sqrt(jnp.float32(n_hiddens))
    w1 = jax.random.uniform(k1, (n_states, n_hiddens), jnp.float32, -lim1, lim1)
    b1 = jax.random.uniform(k2, (1, n_hiddens), jnp.float32, -lim1, lim1)
    w2 = jax.random.uniform(k3, (n_hiddens, n_actions), jnp.float32, -lim2, lim2)
    b2 = jax.random.uniform(k4, (1, n_actions), jnp.float32, -lim2, lim2)
    return w1, b1, w2, b2


def _reference(x, w1, b1, w2, b2):
    hp = jax.lax.Precision.HIGHEST
    h = jnp.maximum(jnp.dot(x, w1, precision=hp) + b1, 0.0)
    return jax.nn.softmax(jnp.dot(h, w2, precision=hp) + b2, axis=1)


if __name__ == "__main__":
    # Small shapes consistent with the module: batch=8, n_states=16,
    # n_hiddens=32, n_actions=8.
    B, n_states, n_hiddens, n_actions = 8, 16, 32, 8

    key = jax.random.PRNGKey(0)
    kx, kp, kx2 = jax.random.split(key, 3)
    x = jax.random.normal(kx, (B, n_states), jnp.float32)
    w1, b1, w2, b2 = init_params(kp, n_states, n_hiddens, n_actions)
    ref = _reference(x, w1, b1, w2, b2)

    # --- f32 MXU-operand path (near-exact) ---
    params_f32 = prepare_params(w1, b1, w2, b2, matmul_dtype=jnp.float32)
    out = jax.block_until_ready(net_forward(x, *params_f32, n_actions=n_actions))
    assert out.shape == (B, n_actions)
    assert jnp.allclose(out, ref, atol=2e-4, rtol=1e-3)
    assert jnp.allclose(jnp.sum(out, axis=1), 1.0, atol=1e-3)

    # --- default bf16 MXU-operand path (v6e/v7x native); f32 epilogue ---
    params_bf16 = prepare_params(w1, b1, w2, b2)
    out_bf16 = jax.block_until_ready(
        net_forward(x, *params_bf16, n_actions=n_actions))
    assert out_bf16.shape == (B, n_actions)
    assert jnp.allclose(out_bf16, ref, atol=2e-2, rtol=2e-2)

    # --- larger, non-tile-aligned batch: ragged grid (3 steps at block_b=128),
    #     no batch padding, partial last block masked on writeback ---
    B2 = 300
    x2 = jax.random.normal(kx2, (B2, n_states), jnp.float32)
    out2 = jax.block_until_ready(
        net_forward(x2, *params_f32, n_actions=n_actions, block_b=128))
    ref2 = _reference(x2, w1, b1, w2, b2)
    assert out2.shape == (B2, n_actions)
    assert jnp.allclose(out2, ref2, atol=2e-4, rtol=1e-3)
    assert jnp.allclose(jnp.sum(out2, axis=1), 1.0, atol=1e-3)

    print("KERNEL_OK")
</pallas_src>

<mosaic_0001>
module attributes {stable_mosaic.version = 11 : i64} {
  func.func @_net_kernel(%arg0: i32, %arg1: memref<8x16xf32, #tpu.memory_space<vmem>>, %arg2: memref<16x128xf32, #tpu.memory_space<vmem>>, %arg3: memref<1x128xf32, #tpu.memory_space<vmem>>, %arg4: memref<128x128xf32, #tpu.memory_space<vmem>>, %arg5: memref<1x128xf32, #tpu.memory_space<vmem>>, %arg6: memref<8x128xf32, #tpu.memory_space<vmem>>) attributes {dimension_semantics = [#tpu.dimension_semantics<parallel>], iteration_bounds = array<i64: 1>, scalar_prefetch = 0 : i64, scratch_operands = 0 : i64, tpu.core_type = #tpu.core_type<tc>, window_params = [{transform_indices = @transform_0, window_bounds = array<i64: 8, 16>}, {pipeline_mode = #tpu.pipeline_mode<synchronous>, transform_indices = @transform_1, window_bounds = array<i64: 16, 128>}, {pipeline_mode = #tpu.pipeline_mode<synchronous>, transform_indices = @transform_2, window_bounds = array<i64: 1, 128>}, {pipeline_mode = #tpu.pipeline_mode<synchronous>, transform_indices = @transform_3, window_bounds = array<i64: 128, 128>}, {pipeline_mode = #tpu.pipeline_mode<synchronous>, transform_indices = @transform_4, window_bounds = array<i64: 1, 128>}, {transform_indices = @transform_5, window_bounds = array<i64: 8, 128>}]} {
    %c0 = arith.constant 0 : index
    %c0_0 = arith.constant 0 : index
    %0 = vector.load %arg1[%c0, %c0_0] : memref<8x16xf32, #tpu.memory_space<vmem>>, vector<8x16xf32>
    %c0_1 = arith.constant 0 : index
    %c0_2 = arith.constant 0 : index
    %1 = vector.load %arg2[%c0_1, %c0_2] : memref<16x128xf32, #tpu.memory_space<vmem>>, vector<16x128xf32>
    %cst = arith.constant dense<0.000000e+00> : vector<8x128xf32>
    %2 = tpu.matmul %0, %1, %cst {dimension_numbers = #tpu.dot_dimension_numbers<[1], [0], [0], [1], [0, 0, 1, 1], [], []>} : vector<8x16xf32>, vector<16x128xf32>, vector<8x128xf32> -> vector<8x128xf32>
    %c0_3 = arith.constant 0 : index
    %c0_4 = arith.constant 0 : index
    %3 = vector.load %arg3[%c0_3, %c0_4] : memref<1x128xf32, #tpu.memory_space<vmem>>, vector<1x128xf32>
    %4 = vector.broadcast %3 : vector<1x128xf32> to vector<8x128xf32>
    %5 = arith.addf %2, %4 : vector<8x128xf32>
    %cst_5 = arith.constant 0.000000e+00 : f32
    %6 = vector.broadcast %cst_5 : f32 to vector<8x128xf32>
    %7 = arith.maximumf %5, %6 : vector<8x128xf32>
    %c0_6 = arith.constant 0 : index
    %c0_7 = arith.constant 0 : index
    %8 = vector.load %arg4[%c0_6, %c0_7] : memref<128x128xf32, #tpu.memory_space<vmem>>, vector<128x128xf32>
    %cst_8 = arith.constant dense<0.000000e+00> : vector<8x128xf32>
    %9 = tpu.matmul %7, %8, %cst_8 {dimension_numbers = #tpu.dot_dimension_numbers<[1], [0], [0], [1], [0, 0, 1, 1], [], []>} : vector<8x128xf32>, vector<128x128xf32>, vector<8x128xf32> -> vector<8x128xf32>
    %c0_9 = arith.constant 0 : index
    %c0_10 = arith.constant 0 : index
    %10 = vector.load %arg5[%c0_9, %c0_10] : memref<1x128xf32, #tpu.memory_space<vmem>>, vector<1x128xf32>
    %11 = vector.broadcast %10 : vector<1x128xf32> to vector<8x128xf32>
    %12 = arith.addf %9, %11 : vector<8x128xf32>
    %cst_11 = arith.constant dense<0xFF800000> : vector<8xf32>
    %13 = vector.multi_reduction <maximumf>, %12, %cst_11 [1] : vector<8x128xf32> to vector<8xf32>
    %14 = vector.shape_cast %13 : vector<8xf32> to vector<8x1xf32>
    %15 = vector.broadcast %14 : vector<8x1xf32> to vector<8x128xf32>
    %16 = arith.subf %12, %15 : vector<8x128xf32>
    %17 = math.exp %16 : vector<8x128xf32>
    %cst_12 = arith.constant dense<0.000000e+00> : vector<8xf32>
    %18 = vector.multi_reduction <add>, %17, %cst_12 [1] : vector<8x128xf32> to vector<8xf32>
    %19 = vector.shape_cast %18 : vector<8xf32> to vector<8x1xf32>
    %20 = tpu.reciprocal %19 {approx = true} : vector<8x1xf32> -> vector<8x1xf32>
    %21 = arith.mulf %19, %20 : vector<8x1xf32>
    %cst_13 = arith.constant 2.000000e+00 : f32
    %22 = vector.broadcast %cst_13 : f32 to vector<8x1xf32>
    %23 = arith.subf %22, %21 : vector<8x1xf32>
    %24 = arith.mulf %20, %23 : vector<8x1xf32>
    %25 = vector.broadcast %24 : vector<8x1xf32> to vector<8x128xf32>
    %26 = arith.mulf %17, %25 : vector<8x128xf32>
    %c0_14 = arith.constant 0 : index
    %c0_15 = arith.constant 0 : index
    %27 = vector.load %arg6[%c0_14, %c0_15] : memref<8x128xf32, #tpu.memory_space<vmem>>, vector<8x128xf32>
    tpu.vector_store %arg6[%c0_14, %c0_15], %26 {strides = array<i32>} : memref<8x128xf32, #tpu.memory_space<vmem>>, vector<8x128xf32>,
    return
  }
  func.func @transform_0(%arg0: i32) -> (i32, i32) {
    %c0_i32 = arith.constant 0 : i32
    %c0_i32_0 = arith.constant 0 : i32
    return %arg0, %c0_i32 : i32, i32
  }
  func.func @transform_1(%arg0: i32) -> (i32, i32) {
    %c0_i32 = arith.constant 0 : i32
    %c0_i32_0 = arith.constant 0 : i32
    %c0_i32_1 = arith.constant 0 : i32
    return %c0_i32, %c0_i32_0 : i32, i32
  }
  func.func @transform_2(%arg0: i32) -> (i32, i32) {
    %c0_i32 = arith.constant 0 : i32
    %c0_i32_0 = arith.constant 0 : i32
    %c0_i32_1 = arith.constant 0 : i32
    return %c0_i32, %c0_i32_0 : i32, i32
  }
  func.func @transform_3(%arg0: i32) -> (i32, i32) {
    %c0_i32 = arith.constant 0 : i32
    %c0_i32_0 = arith.constant 0 : i32
    %c0_i32_1 = arith.constant 0 : i32
    return %c0_i32, %c0_i32_0 : i32, i32
  }
  func.func @transform_4(%arg0: i32) -> (i32, i32) {
    %c0_i32 = arith.constant 0 : i32
    %c0_i32_0 = arith.constant 0 : i32
    %c0_i32_1 = arith.constant 0 : i32
    return %c0_i32, %c0_i32_0 : i32, i32
  }
  func.func @transform_5(%arg0: i32) -> (i32, i32) {
    %c0_i32 = arith.constant 0 : i32
    %c0_i32_0 = arith.constant 0 : i32
    return %arg0, %c0_i32 : i32, i32
  }
}

</mosaic_0001>

<bundles_post_ra>
// kernel: net_forward.1
= control target key start
LH: loop header
LB: loop body
LE: loop exit
PB: predicated region body
PF: predicated region fallthrough
CT: control target
= control target key end

     0   :  { %10 = vsyncpa [#allocation3], 0  ;;  %s565_s0 = inlined_call_operand.hbm [shape: f32[8,16], index: 0, kind: input, shape index: {}]   ;;  %s566_s1 = inlined_call_operand.hbm [shape: f32[16,128], index: 1, kind: input, shape index: {}]   ;;  %s567_s2 = inlined_call_operand.vmem [shape: f32[1,128], index: 2, kind: input, shape index: {}]   ;;  %s568_s3 = inlined_call_operand.hbm [shape: f32[128,128], index: 3, kind: input, shape index: {}]   ;;  %s569_s4 = inlined_call_operand.vmem [shape: f32[1,128], index: 4, kind: input, shape index: {}]   ;;  %s570_s5 = inlined_call_operand.hbm [shape: f32[8,128], index: 5, kind: output, shape index: {}]  }
   0x1   :  { %11 = vsyncpa [#allocation6], 0 }
   0x2   :  { %12 = vsyncpa [#allocation4], 0  ;;  %s466_s18 = smov [#allocation5]   ;;  %s372_s22 = scalar_lea.hbm %s566_s1, 256 }
   0x3   :  { %s28_s19 = sshll.u32 %s466_s18, 4  ;;  %p373_p0 = scmp.ne.s32.totalorder %s566_s1, %s372_s22  ;;  %s29_s19 = int_to_ptr.vmem [resolvable:$true] %s28_s19 }
   0x4   :  { %p376_p1 = scmp.lt.u32.totalorder %s372_s22, %s566_s1 }
   0x6   :  { %p378_p2 = pnand %p376_p1, %p373_p0 }
   0x8   :  { %381 = shalt.err (!%p378_p2)
}
   0x9   :  { %s382_s27 = scalar_lea.vmem %s29_s19, 256  ;;  %p387_p4 = scmp.lt.s32.totalorder %s29_s19, %s29_s19 }
   0xa   :  { %p383_p3 = scmp.ne.s32.totalorder %s29_s19, %s382_s27  ;;  %p388_p5 = scmp.lt.s32.totalorder %s382_s27, %s382_s27 }
   0xc   :  { %p389_p6 = por %p388_p5, %p387_p4 }
   0xe   :  { %p390_p7 = pnand %p389_p6, %p383_p3 }
  0x10   :  { %393 = shalt.err (!%p390_p7)
}
  0x11   :  { %s467_s28 = smov 128   ;;  %s468_s29 = smov 8  }
  0x12   :  { %34 = dma.hbm_to_vmem [thread:$0]  %s566_s1, 256, %s29_s19, [#allocation6], %s467_s28, %s467_s28, %s468_s29  }
  0x13   :  { %s469_s7 = smov [#allocation2]   ;;  %s470_s9 = smov [#allocation7]  }
  0x14   :  { %s19_s8 = sshll.u32 %s469_s7, 4  ;;  %s42_s10 = sshll.u32 %s470_s9, 4  ;;  %s20_s8 = int_to_ptr.vmem [resolvable:$true] %s19_s8  ;;  %s43_s10 = int_to_ptr.vmem [resolvable:$true] %s42_s10 }
  0x15   :  { %s394_s13 = scalar_lea.hbm %s565_s0, 128 }
  0x16   :  { %p395_p8 = scmp.ne.s32.totalorder %s565_s0, %s394_s13  ;;  %p398_p9 = scmp.lt.u32.totalorder %s394_s13, %s565_s0 }
  0x18   :  { %p400_p10 = pnand %p398_p9, %p395_p8 }
  0x1a   :  { %403 = shalt.err (!%p400_p10)
}
  0x1b   :  { %s404_s1 = scalar_lea.vmem %s20_s8, 128  ;;  %p409_p12 = scmp.lt.s32.totalorder %s20_s8, %s20_s8 }
  0x1c   :  { %p405_p11 = scmp.ne.s32.totalorder %s20_s8, %s404_s1  ;;  %p410_p13 = scmp.lt.s32.totalorder %s404_s1, %s404_s1 }
  0x1e   :  { %p411_p0 = por %p410_p13, %p409_p12 }
  0x20   :  { %p412_p1 = pnand %p411_p0, %p405_p11 }
  0x22   :  { %415 = shalt.err (!%p412_p1)
}
  0x23   :  { %22 = dma.hbm_to_vmem [thread:$0]  %s565_s0, 128, %s20_s8, [#allocation3]  }
  0x24   :  { %s416_s22 = scalar_lea.hbm %s568_s3, 2048 }
  0x25   :  { %p417_p2 = scmp.ne.s32.totalorder %s568_s3, %s416_s22  ;;  %p420_p3 = scmp.lt.u32.totalorder %s416_s22, %s568_s3 }
  0x27   :  { %p422_p4 = pnand %p420_p3, %p417_p2 }
  0x29   :  { %425 = shalt.err (!%p422_p4)
}
  0x2a   :  { %s426_s27 = scalar_lea.vmem %s43_s10, 2048  ;;  %p431_p6 = scmp.lt.s32.totalorder %s43_s10, %s43_s10 }
  0x2b   :  { %p427_p5 = scmp.ne.s32.totalorder %s43_s10, %s426_s27  ;;  %p432_p7 = scmp.lt.s32.totalorder %s426_s27, %s426_s27 }
  0x2d   :  { %p433_p8 = por %p432_p7, %p431_p6 }
  0x2f   :  { %p434_p9 = pnand %p433_p8, %p427_p5 }
  0x31   :  { %437 = shalt.err (!%p434_p9)
}
  0x32   :  { %48 = dma.hbm_to_vmem [thread:$0]  %s568_s3, 2048, %s43_s10, [#allocation6], %s467_s28, %s467_s28, %s468_s29  }
  0x33   :  { %460 = dma.done.wait [#allocation3], 128  }
  0x34   :  { %461 = vsyncadd [#allocation3], 4294967168 }
  0x35   :  { %462 = dma.done.wait [#allocation6], 2304  }
  0x36   :  { %463 = vsyncadd [#allocation6], 4294964992  ;;  %v471_v0 = vmov 0.0|0.0   ;;  %vm472_vm0 = vmmov 0   ;;  %v473_v1 = vmov 0.0   ;;  %v61_v2 = vld [vmem:[#allocation5] sm:$0xff] }
  0x37   :  { %332 = vmatprep.subr.bf16.mxu0 %v471_v0  ;;  %294 = vmatprep.mubr.msk.f32.mxu0 %vm472_vm0, %v473_v1  ;;  %v62_v3 = vld [vmem:[#allocation5 + $0x8] sm:$0xff]  ;;  %v145_v5 = vld [vmem:[#allocation7] sm:$0xff]  ;;  %v146_v6 = vld [vmem:[#allocation7 + $0x8] sm:$0xff]  ;;  %vm70_vm1 = vcmask 130048  }
  0x38   :  { %335 = vmatprep.subr.bf16.mxu1 %v471_v0  ;;  %329 = vmatprep.mubr.msk.f32.mxu1 %vm472_vm0, %v473_v1  ;;  %v333_v4 = vpack.c.bf16 %v62_v3, %v61_v2  ;;  %v147_v7 = vld [vmem:[#allocation7 + $0x10] sm:$0xff]  ;;  %v336_v8 = vpack.c.bf16 %v146_v6, %v145_v5  ;;  %v148_v9 = vld [vmem:[#allocation7 + $0x18] sm:$0xff]  ;;  %v60_v10 = vld [vmem:[#allocation2] sm:$0xff] }
  0x39   :  { %v339_v11 = vpack.c.bf16 %v148_v9, %v147_v7  ;;  %v149_v12 = vld [vmem:[#allocation7 + $0x20] sm:$0xff]  ;;  %v150_v13 = vld [vmem:[#allocation7 + $0x28] sm:$0xff]  ;;  %v151_v15 = vld [vmem:[#allocation7 + $0x30] sm:$0xff] }
  0x3a   :  { %334 = vmatpush3.bf16.msra.mxu0 %v333_v4  ;;  %337 = vmatpush3.bf16.msra.mxu1 %v336_v8  ;;  %v342_v14 = vpack.c.bf16 %v150_v13, %v149_v12  ;;  %v152_v16 = vld [vmem:[#allocation7 + $0x38] sm:$0xff]  ;;  %v153_v18 = vld [vmem:[#allocation7 + $0x40] sm:$0xff]  ;;  %v154_v19 = vld [vmem:[#allocation7 + $0x48] sm:$0xff] }
  0x3b   :  { %338 = vmatprep.subr.bf16.mxu1 %v471_v0  ;;  %v345_v17 = vpack.c.bf16 %v152_v16, %v151_v15  ;;  %v348_v20 = vpack.c.bf16 %v154_v19, %v153_v18  ;;  %v155_v21 = vld [vmem:[#allocation7 + $0x50] sm:$0xff]  ;;  %v156_v22 = vld [vmem:[#allocation7 + $0x58] sm:$0xff]  ;;  %v157_v24 = vld [vmem:[#allocation7 + $0x60] sm:$0xff] }
  0x3c   :  { %v351_v23 = vpack.c.bf16 %v156_v22, %v155_v21  ;;  %v158_v25 = vld [vmem:[#allocation7 + $0x68] sm:$0xff]  ;;  %v159_v27 = vld [vmem:[#allocation7 + $0x70] sm:$0xff]  ;;  %v160_v28 = vld [vmem:[#allocation7 + $0x78] sm:$0xff] }
  0x3d   :  { %295 = vmatmul.mubr.msk.f32.vlgmr.msra.gmra.mrb[0].mxu0 %vm70_vm1, %v60_v10  ;;  %v354_v26 = vpack.c.bf16 %v158_v25, %v157_v24  ;;  %v357_v29 = vpack.c.bf16 %v160_v28, %v159_v27  ;;  %v267_v30 = vld [vmem:[%s567_s2] ss:$0 sm:$0xff]  ;;  %s474_s2 = smov [#allocation8]  }
  0x3e   :  { %340 = vmatpush3.bf16.msra.mxu1 %v339_v11  ;;  %v269_v35 = vld [vmem:[%s569_s4] ss:$0 sm:$0xff]  ;;  %s257_s7 = sshll.u32 %s474_s2, 4  ;;  %s258_s7 = int_to_ptr.vmem [resolvable:$true] %s257_s7 }
  0x3f   :  { %341 = vmatprep.subr.bf16.mxu1 %v471_v0  ;;  %s438_s4 = scalar_lea.vmem %s258_s7, 128  ;;  %p443_p11 = scmp.lt.s32.totalorder %s258_s7, %s258_s7 }
  0x40   :  { %p439_p10 = scmp.ne.s32.totalorder %s258_s7, %s438_s4  ;;  %p444_p12 = scmp.lt.s32.totalorder %s438_s4, %s438_s4 }
  0x42   :  { %343 = vmatpush3.bf16.msra.mxu1 %v342_v14  ;;  %p445_p13 = por %p444_p12, %p443_p11 }
  0x43   :  { %344 = vmatprep.subr.bf16.mxu1 %v471_v0 }
  0x44   :  { %p446_p0 = pnand %p445_p13, %p439_p10 }
  0x46   :  { %346 = vmatpush3.bf16.msra.mxu1 %v345_v17 }
  0x47   :  { %347 = vmatprep.subr.bf16.mxu1 %v471_v0 }
  0x4a   :  { %349 = vmatpush3.bf16.msra.mxu1 %v348_v20 }
  0x4b   :  { %350 = vmatprep.subr.bf16.mxu1 %v471_v0 }
  0x4e   :  { %352 = vmatpush3.bf16.msra.mxu1 %v351_v23 }
  0x4f   :  { %353 = vmatprep.subr.bf16.mxu1 %v471_v0 }
  0x52   :  { %355 = vmatpush3.bf16.msra.mxu1 %v354_v26 }
  0x53   :  { %356 = vmatprep.subr.bf16.mxu1 %v471_v0 }
  0x56   :  { %358 = vmatpush3.bf16.msra.mxu1 %v357_v29 }
 0x110   :  { %v140_v31 = vpop.f32.mrb[0].mxu0 }
 0x111   :  { %v141_v32 = vadd.f32 %v267_v30, %v140_v31  ;;  %v296_v33 = vpop.f32.mrb[1].mxu0 }
 0x113   :  { %v144_v34 = vmax.f32 %v141_v32, 0.0 }
 0x115   :  { %330 = vmatmul.mubr.f32.vlgmr.msra.gmra.mrb[0].mxu1 %v144_v34 }
 0x1e8   :  { %v234_v36 = vpop.f32.mrb[0].mxu1 }
 0x1e9   :  { %v235_v37 = vadd.f32 %v269_v35, %v234_v36  ;;  %v331_v38 = vpop.f32.mrb[1].mxu1 }
 0x1eb   :  { %238 = vmax.xlane.f32.xlu0 %v235_v37 }
 0x278   :  { %v239_v39 = vpop.xlane.xlu0 %238 }
 0x279   :  { %v240_v40 = vsub.f32 %v235_v37, %v239_v39 }
 0x27b   :  { %v241_v41 = vmul.f32 1.442695, %v240_v40 }
 0x27d   :  { %368 = vpow2.f32 %v241_v41 }
 0x287   :  { %v369_v42 = vpop.eup %368 }
 0x288   :  { %243 = vadd.xlane.f32.xlu0 %v369_v42 }
 0x315   :  { %v244_v43 = vpop.xlane.xlu0 %243 }
 0x316   :  { %370 = vrcp.f32 %v244_v43 }
 0x320   :  { %v371_v44 = vpop.eup %370 }
 0x321   :  { %v246_v45 = vmul.f32 %v371_v44, %v244_v43 }
 0x323   :  { %v247_v46 = vsub.f32 2.0, %v246_v45 }
 0x325   :  { %v248_v47 = vmul.f32 %v371_v44, %v247_v46 }
 0x327   :  { %v249_v48 = vmul.f32 %v369_v42, %v248_v47 }
 0x329   :  { %250 = vst [vmem:[#allocation8] sm:$0xff] %v249_v48 }
 0x32a   :  { %449 = shalt.err (!%p446_p0)
}
 0x32b   :  { %s450_s10 = scalar_lea.hbm %s570_s5, 128 }
 0x32c   :  { %p451_p1 = scmp.ne.s32.totalorder %s570_s5, %s450_s10  ;;  %p454_p2 = scmp.lt.u32.totalorder %s450_s10, %s570_s5 }
 0x32e   :  { %p456_p3 = pnand %p454_p2, %p451_p1 }
 0x330   :  { %459 = shalt.err (!%p456_p3)
}
 0x331   :  { %260 = dma.vmem_to_hbm [thread:$0]  %s258_s7, 128, %s570_s5, [#allocation4]  }
 0x332   :  { %464 = dma.done.wait [#allocation4], 128  }
 0x333   :  { %465 = vsyncadd [#allocation4], 4294967168 }
 0x334   :  { %264 = vsyncpa [#allocation3], 1 }
 0x335   :  { %265 = vsyncpa [#allocation6], 1 }
 0x336   :  { %266 = vsyncpa [#allocation4], 1 }

</bundles_post_ra>
